<compile_context>
chip_gen: v6e
topology: v6e:2x2x1
jax: 0.10.0
libtpu: 0.0.40
codegen_flags: <defaults>
</compile_context>

<pallas_src>
import jax
import jax.numpy as jnp
from jax.experimental import pallas as pl
from jax.experimental.pallas import tpu as pltpu


def _critic_kernel(xT_ref, w1_ref, b1_ref, w2_ref, b2_ref, w3_ref, b3_ref,
                   o_ref):
    # xT: [D_in, T] f32 (batch in lanes); w1: [H, D_in]; w2: [H, H] (bf16/f32);
    # b1/b2/w3: [H, 1] f32; b3: [1, 1] f32; out block: [1, T] f32 (lane-dense).

    # In-kernel cast to the matmul dtype (VPU op, hidden under MXU work).
    x = xT_ref[...].astype(w1_ref.dtype)

    # Layer 1: single fused K = D_in contraction, [H, D_in] @ [D_in, T].
    h1 = jnp.dot(w1_ref[...], x,
                 preferred_element_type=jnp.float32) + b1_ref[...]
    h1 = jnp.maximum(h1, 0.0)

    # Layer 2: [H, H] @ [H, T] (f32 accumulation even on the bf16 path).
    h2 = jnp.dot(w2_ref[...], h1.astype(w2_ref.dtype),
                 preferred_element_type=jnp.float32) + b2_ref[...]
    h2 = jnp.maximum(h2, 0.0)

    # Layer 3 (H -> 1): f32 VPU multiply + sublane (XLU) reduce. Result is
    # already the lane-dense [1, T] row -> no transpose before the store.
    q = jnp.sum(h2 * w3_ref[...], axis=0, keepdims=True) + b3_ref[...]
    o_ref[...] = q.astype(o_ref.dtype)


def _pick_tiling(batch, tile_b_req):
    """128-aligned batch tile; even tile count (and >=8 for big batches)."""
    cdiv = lambda a, b: -(-a // b)
    n_units = cdiv(batch, 128)                       # 128-row lane units needed
    tile_units_req = max(1, int(tile_b_req) // 128)
    num_tiles = cdiv(n_units, tile_units_req)
    if n_units >= 64:
        # Plenty of work: keep >= 8 tiles so both v7x cores stay busy while
        # tiles remain >= 1024 rows (per-step overhead stays ~2-3%).
        num_tiles = max(num_tiles, 8)
    if num_tiles % 2 == 1 and n_units >= 2:
        num_tiles += 1                               # even split for megacore
    num_tiles = min(num_tiles, n_units)              # never below 128-row tiles
    tile_units = cdiv(n_units, num_tiles)
    num_tiles = cdiv(n_units, tile_units)            # re-derive after rounding
    if num_tiles % 2 == 1 and num_tiles > 1:
        num_tiles += 1                               # pad one extra tile (zeros)
    tile_b = tile_units * 128
    return tile_b, num_tiles, num_tiles * tile_b


def ddpg_mlp_critic_forward(s, a, params, *, tile_b=4096, use_bf16=True):
    """Pallas forward for DDPG_MLP_CRITIC.

    s: [B, state_dim], a: [B, action_dim].
    params: dict with w1 [Ds+Da, H], b1 [1, H], w2 [H, H], b2 [1, H],
            w3 [H, 1], b3 [1, 1] (x @ W orientation, as produced by init_params).
    Returns q: [B, 1] float32.
    """
    B, state_dim = s.shape
    action_dim = a.shape[1]
    hidden = params["b1"].shape[-1]
    d_in = state_dim + action_dim

    tile_b, num_tiles, padded_b = _pick_tiling(B, tile_b)

    # Feature-major input xT [D_in, padded_B]: one small concat+transpose pass
    # in XLA (D_in columns per row); the kernel is MXU-push bound so this is
    # off the critical path, and it removes all in-kernel transposes.
    x = jnp.concatenate([s.astype(jnp.float32), a.astype(jnp.float32)], axis=1)
    if padded_b != B:
        x = jnp.pad(x, ((0, padded_b - B), (0, 0)))
    xT = x.T                                                    # [D_in, padded_b]

    mm_dtype = jnp.bfloat16 if use_bf16 else jnp.float32
    # Weights in feature-major ([out, in]) orientation; biases as [H, 1] columns.
    w1 = params["w1"].T.astype(mm_dtype)                        # [H, D_in]
    w2 = params["w2"].T.astype(mm_dtype)                        # [H, H]
    b1 = params["b1"].reshape(hidden, 1).astype(jnp.float32)    # [H, 1]
    b2 = params["b2"].reshape(hidden, 1).astype(jnp.float32)    # [H, 1]
    w3 = params["w3"].reshape(hidden, 1).astype(jnp.float32)    # [H, 1]
    b3 = params["b3"].reshape(1, 1).astype(jnp.float32)         # [1, 1]

    def whole(arr):  # whole-array block, resident across the batch grid
        return pl.BlockSpec(arr.shape, lambda i: (0,) * arr.ndim)

    flops = 2 * padded_b * (d_in * hidden + hidden * hidden + hidden)
    bytes_accessed = (padded_b * (d_in + 1) * 4
                      + (w1.size + w2.size) * jnp.dtype(mm_dtype).itemsize
                      + (b1.size + b2.size + w3.size + b3.size) * 4)

    out = pl.pallas_call(
        _critic_kernel,
        out_shape=jax.ShapeDtypeStruct((1, padded_b), jnp.float32),
        grid=(num_tiles,),
        in_specs=[
            pl.BlockSpec((d_in, tile_b), lambda i: (0, i)),
            whole(w1), whole(b1), whole(w2), whole(b2), whole(w3), whole(b3),
        ],
        # Lane-dense output: one full-width [1, tile_b] row per grid step.
        out_specs=pl.BlockSpec((1, tile_b), lambda i: (0, i)),
        compiler_params=pltpu.CompilerParams(
            dimension_semantics=("parallel",),   # v7x megacore over batch tiles
        ),
        cost_estimate=pl.CostEstimate(
            flops=flops, transcendentals=0, bytes_accessed=bytes_accessed),
    )(xT, w1, b1, w2, b2, w3, b3)

    # [1, padded_b] lane-dense row back to [B, 1].
    return out[0, :B].reshape(B, 1)


def init_params(key, state_dim, action_dim, hidden_dim):
    """Deterministic init mimicking nn.Linear default U(-1/sqrt(fan_in), ...)."""
    d_in = state_dim + action_dim
    keys = jax.random.split(key, 6)

    def lin(kw, kb, fan_in, fan_out):
        bound = 1.0 / jnp.sqrt(jnp.float32(fan_in))
        # PyTorch weight is [out, in]; store transposed [in, out] for x @ W.
        w = jax.random.uniform(kw, (fan_in, fan_out), jnp.float32, -bound, bound)
        b = jax.random.uniform(kb, (1, fan_out), jnp.float32, -bound, bound)
        return w, b

    w1, b1 = lin(keys[0], keys[1], d_in, hidden_dim)
    w2, b2 = lin(keys[2], keys[3], hidden_dim, hidden_dim)
    w3, b3 = lin(keys[4], keys[5], hidden_dim, 1)
    return {"w1": w1, "b1": b1, "w2": w2, "b2": b2, "w3": w3, "b3": b3}


def _reference(s, a, p, mm_dtype=jnp.float32):
    """Pure-JAX reference; mm_dtype selects the matmul operand precision."""
    x = jnp.concatenate([s, a], axis=1)
    h1 = jnp.dot(x.astype(mm_dtype), p["w1"].astype(mm_dtype),
                 preferred_element_type=jnp.float32) + p["b1"]
    h1 = jnp.maximum(h1, 0.0)
    h2 = jnp.dot(h1.astype(mm_dtype), p["w2"].astype(mm_dtype),
                 preferred_element_type=jnp.float32) + p["b2"]
    h2 = jnp.maximum(h2, 0.0)
    return h2 @ p["w3"] + p["b3"]


if __name__ == "__main__":
    state_dim, action_dim, hidden_dim, batch = 28, 4, 32, 8

    key = jax.random.PRNGKey(0)
    k_s, k_a, k_p = jax.random.split(key, 3)
    s = jax.random.normal(k_s, (batch, state_dim), jnp.float32)
    a = jax.random.normal(k_a, (batch, action_dim), jnp.float32)
    params = init_params(k_p, state_dim, action_dim, hidden_dim)

    # Small single-tile case, full f32 path (tight tolerance).
    q = ddpg_mlp_critic_forward(s, a, params, tile_b=128, use_bf16=False)
    jax.block_until_ready(q)
    q_ref = _reference(s, a, params)
    assert q.shape == (batch, 1)
    assert jnp.allclose(q, q_ref, atol=1e-5, rtol=1e-5)

    # Multi-tile + ragged batch, default bf16 matmul path: exercises the batch
    # grid, padding, even-tile logic and the lane-dense output reassembly.
    batch2 = 200
    k_s2, k_a2 = jax.random.split(jax.random.PRNGKey(1), 2)
    s2 = jax.random.normal(k_s2, (batch2, state_dim), jnp.float32)
    a2 = jax.random.normal(k_a2, (batch2, action_dim), jnp.float32)
    q2 = ddpg_mlp_critic_forward(s2, a2, params, tile_b=256)
    jax.block_until_ready(q2)
    q2_ref_f32 = _reference(s2, a2, params)
    q2_ref_bf16 = _reference(s2, a2, params, mm_dtype=jnp.bfloat16)
    assert q2.shape == (batch2, 1)
    assert jnp.allclose(q2, q2_ref_bf16, atol=5e-3, rtol=5e-3)   # vs bf16 ref
    assert jnp.allclose(q2, q2_ref_f32, atol=5e-2, rtol=5e-2)    # sanity vs f32

    # Default tile sizing on a larger ragged batch (still small enough to run fast).
    batch3 = 777
    k_s3, k_a3 = jax.random.split(jax.random.PRNGKey(2), 2)
    s3 = jax.random.normal(k_s3, (batch3, state_dim), jnp.float32)
    a3 = jax.random.normal(k_a3, (batch3, action_dim), jnp.float32)
    q3 = ddpg_mlp_critic_forward(s3, a3, params)   # defaults: tile_b=4096, bf16
    jax.block_until_ready(q3)
    q3_ref_bf16 = _reference(s3, a3, params, mm_dtype=jnp.bfloat16)
    assert q3.shape == (batch3, 1)
    assert jnp.allclose(q3, q3_ref_bf16, atol=5e-3, rtol=5e-3)

    print("KERNEL_OK")
</pallas_src>

<mosaic_0001>
module attributes {stable_mosaic.version = 11 : i64} {
  func.func @_critic_kernel(%arg0: i32, %arg1: memref<32x128xf32, #tpu.memory_space<vmem>>, %arg2: memref<32x32xf32, #tpu.memory_space<vmem>>, %arg3: memref<32x1xf32, #tpu.memory_space<vmem>>, %arg4: memref<32x32xf32, #tpu.memory_space<vmem>>, %arg5: memref<32x1xf32, #tpu.memory_space<vmem>>, %arg6: memref<32x1xf32, #tpu.memory_space<vmem>>, %arg7: memref<1x1xf32, #tpu.memory_space<vmem>>, %arg8: memref<1x128xf32, #tpu.memory_space<vmem>>) attributes {dimension_semantics = [#tpu.dimension_semantics<parallel>], iteration_bounds = array<i64: 1>, scalar_prefetch = 0 : i64, scratch_operands = 0 : i64, tpu.core_type = #tpu.core_type<tc>, window_params = [{transform_indices = @transform_0, window_bounds = array<i64: 32, 128>}, {pipeline_mode = #tpu.pipeline_mode<synchronous>, transform_indices = @transform_1, window_bounds = array<i64: 32, 32>}, {pipeline_mode = #tpu.pipeline_mode<synchronous>, transform_indices = @transform_2, window_bounds = array<i64: 32, 1>}, {pipeline_mode = #tpu.pipeline_mode<synchronous>, transform_indices = @transform_3, window_bounds = array<i64: 32, 32>}, {pipeline_mode = #tpu.pipeline_mode<synchronous>, transform_indices = @transform_4, window_bounds = array<i64: 32, 1>}, {pipeline_mode = #tpu.pipeline_mode<synchronous>, transform_indices = @transform_5, window_bounds = array<i64: 32, 1>}, {pipeline_mode = #tpu.pipeline_mode<synchronous>, transform_indices = @transform_6, window_bounds = array<i64: 1, 1>}, {transform_indices = @transform_7, window_bounds = array<i64: 1, 128>}]} {
    %c0 = arith.constant 0 : index
    %c0_0 = arith.constant 0 : index
    %0 = vector.load %arg1[%c0, %c0_0] : memref<32x128xf32, #tpu.memory_space<vmem>>, vector<32x128xf32>
    %c0_1 = arith.constant 0 : index
    %c0_2 = arith.constant 0 : index
    %1 = vector.load %arg2[%c0_1, %c0_2] : memref<32x32xf32, #tpu.memory_space<vmem>>, vector<32x32xf32>
    %cst = arith.constant dense<0.000000e+00> : vector<32x128xf32>
    %2 = tpu.matmul %1, %0, %cst {dimension_numbers = #tpu.dot_dimension_numbers<[1], [0], [0], [1], [0, 0, 1, 1], [], []>} : vector<32x32xf32>, vector<32x128xf32>, vector<32x128xf32> -> vector<32x128xf32>
    %c0_3 = arith.constant 0 : index
    %c0_4 = arith.constant 0 : index
    %3 = vector.load %arg3[%c0_3, %c0_4] : memref<32x1xf32, #tpu.memory_space<vmem>>, vector<32x1xf32>
    %4 = vector.broadcast %3 : vector<32x1xf32> to vector<32x128xf32>
    %5 = arith.addf %2, %4 : vector<32x128xf32>
    %cst_5 = arith.constant 0.000000e+00 : f32
    %6 = vector.broadcast %cst_5 : f32 to vector<32x128xf32>
    %7 = arith.maximumf %5, %6 : vector<32x128xf32>
    %c0_6 = arith.constant 0 : index
    %c0_7 = arith.constant 0 : index
    %8 = vector.load %arg4[%c0_6, %c0_7] : memref<32x32xf32, #tpu.memory_space<vmem>>, vector<32x32xf32>
    %cst_8 = arith.constant dense<0.000000e+00> : vector<32x128xf32>
    %9 = tpu.matmul %8, %7, %cst_8 {dimension_numbers = #tpu.dot_dimension_numbers<[1], [0], [0], [1], [0, 0, 1, 1], [], []>} : vector<32x32xf32>, vector<32x128xf32>, vector<32x128xf32> -> vector<32x128xf32>
    %c0_9 = arith.constant 0 : index
    %c0_10 = arith.constant 0 : index
    %10 = vector.load %arg5[%c0_9, %c0_10] : memref<32x1xf32, #tpu.memory_space<vmem>>, vector<32x1xf32>
    %11 = vector.broadcast %10 : vector<32x1xf32> to vector<32x128xf32>
    %12 = arith.addf %9, %11 : vector<32x128xf32>
    %cst_11 = arith.constant 0.000000e+00 : f32
    %13 = vector.broadcast %cst_11 : f32 to vector<32x128xf32>
    %14 = arith.maximumf %12, %13 : vector<32x128xf32>
    %c0_12 = arith.constant 0 : index
    %c0_13 = arith.constant 0 : index
    %15 = vector.load %arg6[%c0_12, %c0_13] : memref<32x1xf32, #tpu.memory_space<vmem>>, vector<32x1xf32>
    %16 = vector.broadcast %15 : vector<32x1xf32> to vector<32x128xf32>
    %17 = arith.mulf %14, %16 : vector<32x128xf32>
    %cst_14 = arith.constant dense<0.000000e+00> : vector<128xf32>
    %18 = vector.multi_reduction <add>, %17, %cst_14 [0] : vector<32x128xf32> to vector<128xf32>
    %19 = vector.shape_cast %18 : vector<128xf32> to vector<1x128xf32>
    %c0_15 = arith.constant 0 : index
    %c0_16 = arith.constant 0 : index
    %20 = vector.load %arg7[%c0_15, %c0_16] : memref<1x1xf32, #tpu.memory_space<vmem>>, vector<1x1xf32>
    %21 = vector.broadcast %20 : vector<1x1xf32> to vector<1x128xf32>
    %22 = arith.addf %19, %21 : vector<1x128xf32>
    %c0_17 = arith.constant 0 : index
    %c0_18 = arith.constant 0 : index
    %23 = vector.load %arg8[%c0_17, %c0_18] : memref<1x128xf32, #tpu.memory_space<vmem>>, vector<1x128xf32>
    tpu.vector_store %arg8[%c0_17, %c0_18], %22 {strides = array<i32>} : memref<1x128xf32, #tpu.memory_space<vmem>>, vector<1x128xf32>,
    return
  }
  func.func @transform_0(%arg0: i32) -> (i32, i32) {
    %c0_i32 = arith.constant 0 : i32
    %c0_i32_0 = arith.constant 0 : i32
    return %c0_i32, %arg0 : i32, i32
  }
  func.func @transform_1(%arg0: i32) -> (i32, i32) {
    %c0_i32 = arith.constant 0 : i32
    %c0_i32_0 = arith.constant 0 : i32
    %c0_i32_1 = arith.constant 0 : i32
    return %c0_i32, %c0_i32_0 : i32, i32
  }
  func.func @transform_2(%arg0: i32) -> (i32, i32) {
    %c0_i32 = arith.constant 0 : i32
    %c0_i32_0 = arith.constant 0 : i32
    %c0_i32_1 = arith.constant 0 : i32
    return %c0_i32, %c0_i32_0 : i32, i32
  }
  func.func @transform_3(%arg0: i32) -> (i32, i32) {
    %c0_i32 = arith.constant 0 : i32
    %c0_i32_0 = arith.constant 0 : i32
    %c0_i32_1 = arith.constant 0 : i32
    return %c0_i32, %c0_i32_0 : i32, i32
  }
  func.func @transform_4(%arg0: i32) -> (i32, i32) {
    %c0_i32 = arith.constant 0 : i32
    %c0_i32_0 = arith.constant 0 : i32
    %c0_i32_1 = arith.constant 0 : i32
    return %c0_i32, %c0_i32_0 : i32, i32
  }
  func.func @transform_5(%arg0: i32) -> (i32, i32) {
    %c0_i32 = arith.constant 0 : i32
    %c0_i32_0 = arith.constant 0 : i32
    %c0_i32_1 = arith.constant 0 : i32
    return %c0_i32, %c0_i32_0 : i32, i32
  }
  func.func @transform_6(%arg0: i32) -> (i32, i32) {
    %c0_i32 = arith.constant 0 : i32
    %c0_i32_0 = arith.constant 0 : i32
    %c0_i32_1 = arith.constant 0 : i32
    return %c0_i32, %c0_i32_0 : i32, i32
  }
  func.func @transform_7(%arg0: i32) -> (i32, i32) {
    %c0_i32 = arith.constant 0 : i32
    %c0_i32_0 = arith.constant 0 : i32
    return %c0_i32, %arg0 : i32, i32
  }
}

</mosaic_0001>

<bundles_post_ra>
// kernel: tpu_custom_call.1
= control target key start
LH: loop header
LB: loop body
LE: loop exit
PB: predicated region body
PF: predicated region fallthrough
CT: control target
= control target key end

     0   :  { %s561_s0 = inlined_call_operand.vmem [shape: f32[32,128], index: 0, kind: input, shape index: {}]   ;;  %s562_s1 = inlined_call_operand.vmem [shape: f32[32,32], index: 1, kind: input, shape index: {}]   ;;  %s563_s2 = inlined_call_operand.vmem [shape: f32[32,1], index: 2, kind: input, shape index: {}]   ;;  %s564_s3 = inlined_call_operand.vmem [shape: f32[32,32], index: 3, kind: input, shape index: {}]   ;;  %s565_s4 = inlined_call_operand.vmem [shape: f32[32,1], index: 4, kind: input, shape index: {}]   ;;  %s566_s5 = inlined_call_operand.vmem [shape: f32[32,1], index: 5, kind: input, shape index: {}]   ;;  %s567_s6 = inlined_call_operand.<no memory space> [shape: f32[1,1], index: 6, kind: input, shape index: {}]   ;;  %s568_s7 = inlined_call_operand.hbm [shape: f32[1,128], index: 7, kind: output, shape index: {}]  }
   0x1   :  { %v12_v0 = vstv %s567_s6 }
   0x2   :  { %13 = vst [vmem:[#allocation2] sm:$0x1] %v12_v0 }
   0x3   :  { %v32_v1 = vld [vmem:[%s561_s0 + $0x18] sm:$0xff]  ;;  %v31_v2 = vld [vmem:[%s561_s0 + $0x10] sm:$0xff]  ;;  %vm61_vm0 = vcmask 261120   ;;  %v33_v3 = vld [vmem:[%s562_s1] sm:$0xff]  ;;  %v433_v4 = vmov 0  }
   0x4   :  { %379 = vmatprep.subr.mxu0 %v32_v1  ;;  %409 = vset.pattern.permute.xlu0 %v433_v4  ;;  %v30_v5 = vld [vmem:[%s561_s0 + $0x8] sm:$0xff]  ;;  %v40_v6 = vld [vmem:[%s563_s2 + $0x18] sm:$0xff]  ;;  %v29_v8 = vld [vmem:[%s561_s0] sm:$0xff] }
   0x5   :  { %380 = vmatpush3.msra.mxu0 %v32_v1  ;;  %387 = vmatprep.mubr.msk.f32.mxu0 %vm61_vm0, %v33_v3  ;;  %v38_v7 = vld [vmem:[%s563_s2 + $0x8] sm:$0xff]  ;;  %v39_v9 = vld [vmem:[%s563_s2 + $0x10] sm:$0xff]  ;;  %v37_v11 = vld [vmem:[%s563_s2] sm:$0xff] }
   0x6   :  { %381 = vmatprep.subr.mxu0 %v31_v2  ;;  %58 = vperm.xlu0 %409, %v40_v6   ;;  %v34_v10 = vld [vmem:[%s562_s1 + $0x8] sm:$0xff]  ;;  %v35_v12 = vld [vmem:[%s562_s1 + $0x10] sm:$0xff] }
   0x7   :  { %382 = vmatpush3.msra.mxu0 %v31_v2  ;;  %410 = vset.pattern.permute.xlu1 %v433_v4 }
   0x8   :  { %383 = vmatprep.subr.mxu0 %v30_v5  ;;  %48 = vperm.xlu1 %410, %v38_v7  }
   0x9   :  { %384 = vmatpush3.msra.mxu0 %v30_v5 }
   0xa   :  { %385 = vmatprep.subr.mxu0 %v29_v8  ;;  %53 = vperm.xlu0 %409, %v39_v9  }
   0xb   :  { %14 = vsyncpa [#allocation4], 0  ;;  %386 = vmatpush3.msra.mxu0 %v29_v8  ;;  %v167_v13 = vld [vmem:[%s565_s4] sm:$0xff]  ;;  %v36_v14 = vld [vmem:[%s562_s1 + $0x18] sm:$0xff]  ;;  %v335_v5 = vlaneseq }
   0xc   :  { %388 = vmatmul.mubr.msk.f32.vlgmr.msra.gmra.mxu0 %vm61_vm0, %v34_v10  ;;  %43 = vperm.xlu1 %410, %v37_v11   ;;  %v168_v15 = vld [vmem:[%s565_s4 + $0x8] sm:$0xff]  ;;  %v169_v16 = vld [vmem:[%s565_s4 + $0x10] sm:$0xff]  ;;  %v170_v17 = vld [vmem:[%s565_s4 + $0x18] sm:$0xff] }
   0xd   :  { %390 = vmatprep.mubr.msk.f32.mxu0 %vm61_vm0, %v35_v12  ;;  %v292_v18 = vld [vmem:[%s566_s5] sm:$0xff]  ;;  %v293_v19 = vld [vmem:[%s566_s5 + $0x8] sm:$0xff]  ;;  %v294_v20 = vld [vmem:[%s566_s5 + $0x10] sm:$0xff]  ;;  %v336_v8 = vshrl.u32 %v335_v5, 7 }
   0xe   :  { %173 = vperm.xlu0 %409, %v167_v13   ;;  %v295_v21 = vld [vmem:[%s566_s5 + $0x18] sm:$0xff]  ;;  %v329_v22 = vld [vmem:[#allocation2] sm:$0x1]  ;;  %v164_v40 = vld [vmem:[%s564_s3 + $0x8] sm:$0xff] }
   0xf   :  { %v163_v23 = vld [vmem:[%s564_s3] sm:$0xff]  ;;  %v165_v41 = vld [vmem:[%s564_s3 + $0x10] sm:$0xff]  ;;  %v166_v42 = vld [vmem:[%s564_s3 + $0x18] sm:$0xff]  ;;  %v337_v11 = vsub.s32 0, %v336_v8  ;;  %s434_s3 = smov [#allocation3]  }
  0x10   :  { %391 = vmatmul.mubr.msk.f32.gmra.mxu0 %vm61_vm0, %v36_v14  ;;  %178 = vperm.xlu1 %410, %v168_v15   ;;  %s347_s21 = sshll.u32 %s434_s3, 4  ;;  %s348_s21 = int_to_ptr.vmem [resolvable:$true] %s347_s21 }
  0x11   :  { %401 = vmatprep.mubr.msk.f32.mxu1 %vm61_vm0, %v163_v23  ;;  %s411_s22 = scalar_lea.vmem %s348_s21, 16  ;;  %s415_s23 = scalar_lea.vmem %s348_s21, 32 }
  0x12   :  { %183 = vperm.xlu0 %409, %v169_v16   ;;  %p412_p0 = scmp.ne.s32.totalorder %s348_s21, %s411_s22  ;;  %p416_p1 = scmp.lt.s32.totalorder %s348_s21, %s348_s21 }
  0x13   :  { %p417_p2 = scmp.lt.s32.totalorder %s415_s23, %s411_s22 }
  0x14   :  { %188 = vperm.xlu1 %410, %v170_v17  }
  0x15   :  { %p418_p3 = por %p417_p2, %p416_p1 }
  0x16   :  { %298 = vperm.xlu0 %409, %v292_v18  }
  0x17   :  { %p419_p4 = pnand %p418_p3, %p412_p0 }
  0x18   :  { %303 = vperm.xlu1 %410, %v293_v19  }
  0x1a   :  { %308 = vperm.xlu0 %409, %v294_v20  }
  0x1c   :  { %313 = vperm.xlu1 %410, %v295_v21  }
  0x1e   :  { %332 = vperm.xlu0 %409, %v329_v22  }
  0x81   :  { %v59_v24 = vpop.permute.xlu0 %58 }
  0x83   :  { %v49_v26 = vpop.permute.xlu1 %48 }
  0x85   :  { %v54_v30 = vpop.permute.xlu0 %53 }
  0x87   :  { %v44_v35 = vpop.permute.xlu1 %43 }
  0x89   :  { %v174_v43 = vpop.permute.xlu0 %173 }
  0x8b   :  { %v179_v44 = vpop.permute.xlu1 %178 }
  0x8d   :  { %v184_v45 = vpop.permute.xlu0 %183 }
  0x8f   :  { %v189_v46 = vpop.permute.xlu1 %188 }
  0x91   :  { %v299_v51 = vpop.permute.xlu0 %298 }
  0x93   :  { %v304_v56 = vpop.permute.xlu1 %303 }
  0x95   :  { %v309_v63 = vpop.permute.xlu0 %308 }
  0x97   :  { %v314_v2 = vpop.permute.xlu1 %313 }
  0x99   :  { %v333_v13 = vpop.permute.xlu0 %332 }
  0x9a   :  { %v338_v15 = vrot.slane %v333_v13, %v337_v11 }
  0xcc   :  { %v389_v25 = vpop.f32.mrf.mxu0 }
  0xcd   :  { %v146_v32 = vadd.f32 %v389_v25, %v49_v26 }
  0xce   :  { %v140_v27 = vpop.f32.mrf.mxu0 }
  0xcf   :  { %v141_v36 = vadd.f32 %v140_v27, %v44_v35  ;;  %v160_v38 = vmax.f32 %v146_v32, 0.0 }
  0xd0   :  { %v392_v28 = vpop.f32.mrf.mxu0 }
  0xd1   :  { %v156_v29 = vadd.f32 %v392_v28, %v59_v24  ;;  %v159_v39 = vmax.f32 %v141_v36, 0.0 }
  0xd2   :  { %v150_v31 = vpop.f32.mrf.mxu0 }
  0xd3   :  { %v162_v33 = vmax.f32 %v156_v29, 0.0  ;;  %v151_v34 = vadd.f32 %v150_v31, %v54_v30 }
  0xd5   :  { %v161_v37 = vmax.f32 %v151_v34, 0.0  ;;  %393 = vmatprep.subr.mxu1 %v162_v33 }
  0xd6   :  { %394 = vmatpush3.msra.mxu1 %v162_v33 }
  0xd7   :  { %395 = vmatprep.subr.mxu1 %v161_v37 }
  0xd8   :  { %396 = vmatpush3.msra.mxu1 %v161_v37 }
  0xd9   :  { %397 = vmatprep.subr.mxu1 %v160_v38 }
  0xda   :  { %398 = vmatpush3.msra.mxu1 %v160_v38 }
  0xdb   :  { %399 = vmatprep.subr.mxu1 %v159_v39 }
  0xdc   :  { %400 = vmatpush3.msra.mxu1 %v159_v39 }
  0xdd   :  { %402 = vmatmul.mubr.msk.f32.vlgmr.msra.gmra.mxu1 %vm61_vm0, %v164_v40 }
  0xde   :  { %404 = vmatprep.mubr.msk.f32.mxu1 %vm61_vm0, %v165_v41 }
  0xe1   :  { %405 = vmatmul.mubr.msk.f32.gmra.mxu1 %vm61_vm0, %v166_v42 }
 0x19d   :  { %v403_v47 = vpop.f32.mrf.mxu1 }
 0x19e   :  { %v275_v48 = vadd.f32 %v403_v47, %v179_v44 }
 0x19f   :  { %v269_v49 = vpop.f32.mrf.mxu1 }
 0x1a0   :  { %v270_v50 = vadd.f32 %v269_v49, %v174_v43  ;;  %v289_v53 = vmax.f32 %v275_v48, 0.0 }
 0x1a1   :  { %v406_v52 = vpop.f32.mrf.mxu1 }
 0x1a2   :  { %v288_v54 = vmax.f32 %v270_v50, 0.0  ;;  %v285_v55 = vadd.f32 %v406_v52, %v189_v46  ;;  %v317_v60 = vmul.f32 %v304_v56, %v289_v53 }
 0x1a3   :  { %v279_v57 = vpop.f32.mrf.mxu1 }
 0x1a4   :  { %v316_v58 = vmul.f32 %v299_v51, %v288_v54  ;;  %v280_v59 = vadd.f32 %v279_v57, %v184_v45  ;;  %v291_v61 = vmax.f32 %v285_v55, 0.0 }
 0x1a6   :  { %v290_v62 = vmax.f32 %v280_v59, 0.0  ;;  %v320_v0 = vadd.f32 %v317_v60, %v316_v58  ;;  %v319_v3 = vmul.f32 %v314_v2, %v291_v61 }
 0x1a8   :  { %v318_v1 = vmul.f32 %v309_v63, %v290_v62 }
 0x1aa   :  { %v321_v4 = vadd.f32 %v320_v0, %v318_v1 }
 0x1ac   :  { %v322_v6 = vadd.f32 %v321_v4, %v319_v3 }
 0x1ae   :  { %v323_v7 = vrot.slane %v322_v6, 4 }
 0x1b0   :  { %v324_v9 = vadd.f32 %v323_v7, %v322_v6 }
 0x1b2   :  { %v325_v10 = vrot.slane %v324_v9, 2 }
 0x1b4   :  { %v326_v12 = vadd.f32 %v325_v10, %v324_v9 }
 0x1b6   :  { %v327_v14 = vrot.slane %v326_v12, 1 }
 0x1b8   :  { %v328_v16 = vadd.f32 %v327_v14, %v326_v12 }
 0x1ba   :  { %v339_v17 = vadd.f32 %v338_v15, %v328_v16 }
 0x1bc   :  { %340 = vst [vmem:[#allocation3] sm:$0x1] %v339_v17 }
 0x1bd   :  { %422 = shalt.err (!%p419_p4)
}
 0x1be   :  { %350 = dma.vmem_to_hbm [thread:$0]  %s348_s21, 16, %s568_s7, [#allocation4]  }
 0x1bf   :  { %431 = dma.done.wait [#allocation4], 16  }
 0x1c0   :  { %432 = vsyncadd [#allocation4], 4294967280 }
 0x1c1   :  { %354 = vsyncpa [#allocation4], 1 }

</bundles_post_ra>
